<compile_context>
chip_gen: v6e
topology: v6e:2x2x1
jax: 0.10.0
libtpu: 0.0.40
codegen_flags: <defaults>
</compile_context>

<pallas_src>
import math

import jax
import jax.numpy as jnp
from jax.experimental import pallas as pl
from jax.experimental.pallas import tpu as pltpu

_LANES = 128            # lane-dense last dim (vreg lane width)
_MAX_BLOCK_ROWS = 1024  # 1024 x 128 f32 = 512 KiB per operand per block


def _lerp_kernel(t_ref, p1_ref, p2_ref, o_ref):
    # t_ref: SMEM scalar (shape (1,)); p1/p2/o: VMEM tiles (block_rows, 128)
    t = t_ref[0]
    p1 = p1_ref[...]
    p2 = p2_ref[...]
    # out = p1*(1-t) + p2*t  ==  p1 + t*(p2 - p1)   (fused form)
    o_ref[...] = (p1 + t * (p2 - p1)).astype(o_ref.dtype)


def _round_up(x, m):
    return ((x + m - 1) // m) * m


def _pack(params, dtype):
    """Flatten + concat a list of arrays into one lane-dense (rows, 128) slab."""
    flat = jnp.concatenate([jnp.asarray(p, dtype).reshape(-1) for p in params])
    n = flat.shape[0]
    rows = _round_up((n + _LANES - 1) // _LANES, 32)   # multiple of 32 sublanes
    block_rows = min(rows, _MAX_BLOCK_ROWS)
    rows = _round_up(rows, block_rows)                 # rows % block_rows == 0
    padded = rows * _LANES
    if padded != n:
        flat = jnp.pad(flat, (0, padded - n))
    return flat.reshape(rows, _LANES), block_rows


def _lerp_slab(t_arr, slab1, slab2, block_rows):
    """One fused, tiled, double-buffered lerp over the whole parameter slab."""
    rows, lanes = slab1.shape
    grid = (rows // block_rows,)
    return pl.pallas_call(
        _lerp_kernel,
        out_shape=jax.ShapeDtypeStruct((rows, lanes), slab1.dtype),
        grid=grid,
        in_specs=[
            pl.BlockSpec(memory_space=pltpu.MemorySpace.SMEM),    # scalar t
            pl.BlockSpec((block_rows, lanes), lambda i: (i, 0)),  # start slab
            pl.BlockSpec((block_rows, lanes), lambda i: (i, 0)),  # stop slab
        ],
        out_specs=pl.BlockSpec((block_rows, lanes), lambda i: (i, 0)),
        compiler_params=pltpu.CompilerParams(
            dimension_semantics=("parallel",)),   # megacore on v7x; no-op v5e/v6e
    )(t_arr, slab1, slab2)


class Line:
    """JAX/Pallas port of the PyTorch `Line` module (elementwise lerp)."""

    def __init__(self, start, stop):
        assert len(start) == len(stop)
        for p1, p2 in zip(start, stop):
            assert p1.shape == p2.shape
        self.start = [jnp.asarray(p) for p in start]
        self.stop = [jnp.asarray(p) for p in stop]
        self._shapes = [p.shape for p in self.start]
        self._sizes = [int(math.prod(s)) for s in self._shapes]
        if self.start:
            self._dtype = jnp.result_type(*[p.dtype for p in self.start])
            # Pack all parameters into a single lane-dense slab once; forward
            # is then a single fused pallas_call over the combined slab.
            self._slab_start, self._block_rows = _pack(self.start, self._dtype)
            self._slab_stop, _ = _pack(self.stop, self._dtype)

    def tangent(self, t):
        # (t is unused, matching the PyTorch module; trivial elementwise sub)
        return [p2 - p1 for p1, p2 in zip(self.start, self.stop)]

    def forward(self, t):
        if not self.start:
            return []
        t_arr = jnp.asarray(t, dtype=jnp.float32).reshape(1)
        out2d = _lerp_slab(t_arr, self._slab_start, self._slab_stop,
                           self._block_rows)
        out_flat = out2d.reshape(-1)
        outs, off = [], 0
        for shape, size in zip(self._shapes, self._sizes):
            outs.append(out_flat[off:off + size].reshape(shape))
            off += size
        return outs

    def __call__(self, t):
        return self.forward(t)


if __name__ == "__main__":
    key = jax.random.PRNGKey(0)

    # Deterministic synthetic "parameter lists" (weights of a tiny model):
    # a conv weight, its bias, a linear weight and its bias.
    param_shapes = [(4, 4, 3, 3), (4,), (32, 16), (32,)]

    start, stop = [], []
    for shape in param_shapes:
        key, k1, k2 = jax.random.split(key, 3)
        start.append(jax.random.normal(k1, shape, dtype=jnp.float32))
        stop.append(jax.random.normal(k2, shape, dtype=jnp.float32))

    t = 0.3
    line = Line(start, stop)

    outs = line(t)
    outs = [jax.block_until_ready(o) for o in outs]

    # Reference check (pure JAX, same semantics as the PyTorch forward).
    refs = [p1 * (1.0 - t) + p2 * t for p1, p2 in zip(start, stop)]
    for o, r in zip(outs, refs):
        assert o.shape == r.shape and o.dtype == r.dtype
        assert jnp.allclose(o, r, atol=1e-5, rtol=1e-5)

    print("KERNEL_OK")
</pallas_src>

<mosaic_0001>
module attributes {stable_mosaic.version = 11 : i64} {
  func.func @_lerp_kernel(%arg0: i32, %arg1: memref<1xf32, #tpu.memory_space<smem>>, %arg2: memref<32x128xf32, #tpu.memory_space<vmem>>, %arg3: memref<32x128xf32, #tpu.memory_space<vmem>>, %arg4: memref<32x128xf32, #tpu.memory_space<vmem>>) attributes {dimension_semantics = [#tpu.dimension_semantics<parallel>], iteration_bounds = array<i64: 1>, scalar_prefetch = 0 : i64, scratch_operands = 0 : i64, tpu.core_type = #tpu.core_type<tc>, window_params = [{transform_indices = @transform_0, window_bounds = array<i64: 1>}, {transform_indices = @transform_1, window_bounds = array<i64: 32, 128>}, {transform_indices = @transform_2, window_bounds = array<i64: 32, 128>}, {transform_indices = @transform_3, window_bounds = array<i64: 32, 128>}]} {
    %c0 = arith.constant 0 : index
    %0 = memref.load %arg1[%c0] : memref<1xf32, #tpu.memory_space<smem>>
    %c0_0 = arith.constant 0 : index
    %c0_1 = arith.constant 0 : index
    %1 = vector.load %arg2[%c0_0, %c0_1] : memref<32x128xf32, #tpu.memory_space<vmem>>, vector<32x128xf32>
    %c0_2 = arith.constant 0 : index
    %c0_3 = arith.constant 0 : index
    %2 = vector.load %arg3[%c0_2, %c0_3] : memref<32x128xf32, #tpu.memory_space<vmem>>, vector<32x128xf32>
    %3 = arith.subf %2, %1 : vector<32x128xf32>
    %4 = vector.broadcast %0 : f32 to vector<32x128xf32>
    %5 = arith.mulf %4, %3 : vector<32x128xf32>
    %6 = arith.addf %1, %5 : vector<32x128xf32>
    %c0_4 = arith.constant 0 : index
    %c0_5 = arith.constant 0 : index
    %7 = vector.load %arg4[%c0_4, %c0_5] : memref<32x128xf32, #tpu.memory_space<vmem>>, vector<32x128xf32>
    tpu.vector_store %arg4[%c0_4, %c0_5], %6 {strides = array<i32>} : memref<32x128xf32, #tpu.memory_space<vmem>>, vector<32x128xf32>,
    return
  }
  func.func @transform_0(%arg0: i32) -> i32 {
    %c0_i32 = arith.constant 0 : i32
    %c0_i32_0 = arith.constant 0 : i32
    return %c0_i32 : i32
  }
  func.func @transform_1(%arg0: i32) -> (i32, i32) {
    %c0_i32 = arith.constant 0 : i32
    %c0_i32_0 = arith.constant 0 : i32
    return %arg0, %c0_i32 : i32, i32
  }
  func.func @transform_2(%arg0: i32) -> (i32, i32) {
    %c0_i32 = arith.constant 0 : i32
    %c0_i32_0 = arith.constant 0 : i32
    return %arg0, %c0_i32 : i32, i32
  }
  func.func @transform_3(%arg0: i32) -> (i32, i32) {
    %c0_i32 = arith.constant 0 : i32
    %c0_i32_0 = arith.constant 0 : i32
    return %arg0, %c0_i32 : i32, i32
  }
}

</mosaic_0001>

<bundles_post_ra>
// kernel: tpu_custom_call.1
= control target key start
LH: loop header
LB: loop body
LE: loop exit
PB: predicated region body
PF: predicated region fallthrough
CT: control target
= control target key end

     0   :  { %9 = vsyncpa [#allocation4], 0  ;;  %s205_s0 = inlined_call_operand.<no memory space> [shape: f32[1], index: 0, kind: input, shape index: {}]   ;;  %s206_s1 = inlined_call_operand.hbm [shape: f32[32,128], index: 1, kind: input, shape index: {}]   ;;  %s207_s2 = inlined_call_operand.hbm [shape: f32[32,128], index: 2, kind: input, shape index: {}]   ;;  %s208_s3 = inlined_call_operand.hbm [shape: f32[32,128], index: 3, kind: output, shape index: {}]  }
   0x1   :  { %10 = vsyncpa [#allocation7], 0 }
   0x2   :  { %11 = vsyncpa [#allocation5], 0  ;;  %s159_s12 = smov [#allocation3]  }
   0x3   :  { %s19_s13 = sshll.u32 %s159_s12, 4  ;;  %s20_s13 = int_to_ptr.vmem [resolvable:$true] %s19_s13 }
   0x4   :  { %s101_s14 = scalar_lea.vmem %s20_s13, 512  ;;  %p106_p1 = scmp.lt.s32.totalorder %s20_s13, %s20_s13 }
   0x5   :  { %p102_p0 = scmp.ne.s32.totalorder %s20_s13, %s101_s14  ;;  %p107_p2 = scmp.lt.s32.totalorder %s101_s14, %s101_s14 }
   0x7   :  { %p108_p3 = por %p107_p2, %p106_p1 }
   0x9   :  { %p109_p4 = pnand %p108_p3, %p102_p0 }
   0xb   :  { %112 = shalt.err (!%p109_p4)
}
   0xc   :  { %s160_s15 = smov 128   ;;  %s161_s16 = smov 8  }
   0xd   :  { %25 = dma.hbm_to_vmem [thread:$0]  %s206_s1, 512, %s20_s13, [#allocation4], %s160_s15, %s160_s15, %s161_s16  }
   0xe   :  { %s162_s19 = smov [#allocation6]  }
   0xf   :  { %s31_s20 = sshll.u32 %s162_s19, 4  ;;  %s32_s20 = int_to_ptr.vmem [resolvable:$true] %s31_s20 }
  0x10   :  { %s121_s21 = scalar_lea.vmem %s32_s20, 512  ;;  %p126_p6 = scmp.lt.s32.totalorder %s32_s20, %s32_s20 }
  0x11   :  { %p122_p5 = scmp.ne.s32.totalorder %s32_s20, %s121_s21  ;;  %p127_p7 = scmp.lt.s32.totalorder %s121_s21, %s121_s21 }
  0x13   :  { %p128_p8 = por %p127_p7, %p126_p6 }
  0x15   :  { %p129_p9 = pnand %p128_p8, %p122_p5 }
  0x17   :  { %132 = shalt.err (!%p129_p9)
}
  0x18   :  { %37 = dma.hbm_to_vmem [thread:$0]  %s207_s2, 512, %s32_s20, [#allocation7], %s160_s15, %s160_s15, %s161_s16  }
  0x19   :  { %153 = dma.done.wait [#allocation4], 512  }
  0x1a   :  { %154 = vsyncadd [#allocation4], 4294966784 }
  0x1b   :  { %155 = dma.done.wait [#allocation7], 512  }
  0x1c   :  { %156 = vsyncadd [#allocation7], 4294966784  ;;  %v45_v0 = vld [vmem:[#allocation3] sm:$0xff]  ;;  %v57_v2 = vstv %s205_s0  ;;  %v46_v3 = vld [vmem:[#allocation3 + $0x8] sm:$0xff]  ;;  %s163_s2 = smov [#allocation8]  }
  0x1d   :  { %v49_v1 = vld [vmem:[#allocation6] sm:$0xff]  ;;  %v50_v5 = vld [vmem:[#allocation6 + $0x8] sm:$0xff]  ;;  %v47_v6 = vld [vmem:[#allocation3 + $0x10] sm:$0xff]  ;;  %s75_s25 = sshll.u32 %s163_s2, 4  ;;  %s76_s25 = int_to_ptr.vmem [resolvable:$true] %s75_s25 }
  0x1e   :  { %v53_v4 = vsub.f32 %v49_v1, %v45_v0  ;;  %v51_v7 = vld [vmem:[#allocation6 + $0x10] sm:$0xff]  ;;  %v54_v8 = vsub.f32 %v50_v5, %v46_v3  ;;  %v48_v10 = vld [vmem:[#allocation3 + $0x18] sm:$0xff]  ;;  %s133_s0 = scalar_lea.vmem %s76_s25, 512  ;;  %p138_p11 = scmp.lt.s32.totalorder %s76_s25, %s76_s25 }
  0x1f   :  { %v55_v9 = vsub.f32 %v51_v7, %v47_v6  ;;  %v52_v11 = vld [vmem:[#allocation6 + $0x18] sm:$0xff]  ;;  %p134_p10 = scmp.ne.s32.totalorder %s76_s25, %s133_s0  ;;  %p139_p12 = scmp.lt.s32.totalorder %s133_s0, %s133_s0 }
  0x20   :  { %v58_v12 = vmul.f32 %v57_v2, %v53_v4  ;;  %v56_v13 = vsub.f32 %v52_v11, %v48_v10  ;;  %v59_v14 = vmul.f32 %v57_v2, %v54_v8 }
  0x21   :  { %v60_v15 = vmul.f32 %v57_v2, %v55_v9  ;;  %p140_p13 = por %p139_p12, %p138_p11 }
  0x22   :  { %v62_v16 = vadd.f32 %v58_v12, %v45_v0  ;;  %v61_v17 = vmul.f32 %v57_v2, %v56_v13  ;;  %v63_v18 = vadd.f32 %v59_v14, %v46_v3 }
  0x23   :  { %v64_v19 = vadd.f32 %v60_v15, %v47_v6  ;;  %p141_p0 = pnand %p140_p13, %p134_p10 }
  0x24   :  { %66 = vst [vmem:[#allocation8] sm:$0xff] %v62_v16  ;;  %v65_v20 = vadd.f32 %v61_v17, %v48_v10  ;;  %67 = vst [vmem:[#allocation8 + $0x8] sm:$0xff] %v63_v18 }
  0x25   :  { %68 = vst [vmem:[#allocation8 + $0x10] sm:$0xff] %v64_v19 }
  0x26   :  { %69 = vst [vmem:[#allocation8 + $0x18] sm:$0xff] %v65_v20 }
  0x27   :  { %144 = shalt.err (!%p141_p0)
}
  0x28   :  { %81 = dma.vmem_to_hbm [thread:$0]  %s76_s25, 512, %s208_s3, [#allocation5], %s160_s15, %s160_s15, %s161_s16  }
  0x29   :  { %157 = dma.done.wait [#allocation5], 512  }
  0x2a   :  { %158 = vsyncadd [#allocation5], 4294966784 }
  0x2b   :  { %85 = vsyncpa [#allocation4], 1 }
  0x2c   :  { %86 = vsyncpa [#allocation7], 1 }
  0x2d   :  { %87 = vsyncpa [#allocation5], 1 }

</bundles_post_ra>
